<compile_context>
chip_gen: v6e
topology: v6e:2x2x1
jax: 0.10.0
libtpu: 0.0.40
codegen_flags: <defaults>
</compile_context>

<pallas_src>
import jax
import jax.numpy as jnp
from jax import lax
from jax.experimental import pallas as pl
from jax.experimental.pallas import tpu as pltpu


def _maxpool2x2_kernel(x_ref, o_ref):
    """One grid step: pool a (R, 2*W) slab of vertical row-pairs down to (R, Wo).

    x_ref row layout: [ image row 2a | image row 2a+1 ]   (W elements each)
    o_ref row layout: [ pooled output row a ]             (Wo = W // 2 elements)
    """
    w = x_ref.shape[-1] // 2
    wo = o_ref.shape[-1]

    x = x_ref[...]

    # (1) Vertical max of the row pair (whole-tile VPU op on static half slices).
    v = jnp.maximum(x[:, :w], x[:, w:])

    # (2) Horizontal max of neighbouring columns: q[:, 2*j] is pooled output j.
    q = jnp.maximum(v[:, : w - 1], v[:, 1:])

    # Zero the unused odd columns so NaN/Inf there cannot leak through the
    # 0-weighted terms of the selection matmul below (0 * Inf = NaN).
    lane = lax.broadcasted_iota(jnp.int32, q.shape, 1)
    q = jnp.where((lane & 1) == 0, q, 0)

    # (3) Compact the even columns of q into dense output lanes.  A fixed lane
    # permutation is awkward on the VPU, so express it as a 0/1 selection matmul:
    # the MXU is idle in this memory-bound kernel and multiply-by-exact-1 keeps
    # values unchanged.
    src = lax.broadcasted_iota(jnp.int32, (w - 1, wo), 0)
    dst = lax.broadcasted_iota(jnp.int32, (w - 1, wo), 1)
    pick_even = src == 2 * dst

    if q.dtype == jnp.bfloat16:
        # bf16 value * exact 1.0 accumulated in f32 is exact; cast back is exact.
        out = jnp.dot(q, pick_even.astype(jnp.bfloat16),
                      preferred_element_type=jnp.float32)
    else:
        # f32 (or upcast) path: split into bf16-exact pieces so the selection stays
        # exact no matter how the compiler decomposes an f32 matmul into MXU passes.
        sel = pick_even.astype(jnp.float32)
        qf = q.astype(jnp.float32)
        q0 = qf.astype(jnp.bfloat16).astype(jnp.float32)        # top ~8 mantissa bits
        r0 = jnp.where(jnp.isfinite(q0), qf - q0, 0.0)          # exact remainder
        q1 = r0.astype(jnp.bfloat16).astype(jnp.float32)        # next ~8 bits
        q2 = r0 - q1                                            # the rest
        out = (jnp.dot(q0, sel, preferred_element_type=jnp.float32)
               + jnp.dot(q1, sel, preferred_element_type=jnp.float32)
               + jnp.dot(q2, sel, preferred_element_type=jnp.float32))

    o_ref[...] = out.astype(o_ref.dtype)


def _choose_block_rows(M, W, Wo, itemsize, vmem_budget_bytes):
    """Pick a large row-block that fits the VMEM budget.

    Accounts for lane padding, pipeline double-buffering AND the in-kernel f32
    compute temporaries (v / q / split pieces / f32 accumulator), so the Mosaic
    scratch allocation stays well below the vmem_limit on every chip generation.
    """
    pad128 = lambda n: -(-n // 128) * 128
    # Double-buffered pipeline tiles: input (2W wide) + output (Wo wide).
    pipeline = 2 * itemsize * (pad128(2 * W) + pad128(max(Wo, 1)))
    # Worst-case in-kernel temporaries (f32 path): ~8 row-sized f32 arrays.
    compute = 8 * 4 * pad128(max(W, 1))
    per_row = pipeline + compute
    rows = max(8, vmem_budget_bytes // per_row)
    # Keep several grid steps on big inputs so both v7x TensorCores get work and
    # the DMA/compute overlap of the software pipeline survives.
    if M >= 4096:
        rows = min(rows, pl.cdiv(M, 4))
    # Respect sublane packing: 8 rows for 4-byte types, 16 for bf16, 32 for int8.
    sub = max(8, 32 // itemsize)
    rows = max(sub, (rows // sub) * sub)
    return min(rows, M)


def max_pool_2x2(x, *, vmem_block_budget_bytes=20 * 1024 * 1024):
    """nn.MaxPool2d(kernel_size=2, stride=2, padding=0) over an NCHW input."""
    N, C, H, W = x.shape
    assert H >= 2 and W >= 2, "pooling window larger than input"
    Ho, Wo = H // 2, W // 2

    # PyTorch floor-drops a trailing odd row/column.  An odd trailing column is
    # dropped naturally inside the kernel; an odd trailing row needs one slice
    # (this line only copies when H is odd).
    if H % 2:
        x = x[:, :, : 2 * Ho, :]

    # Single free, memory-order-preserving view: one row per vertical row-pair of
    # one (n, c) image plane.  No taps are materialized; HBM read traffic = 1x input.
    M = N * C * Ho
    x2 = x.reshape(M, 2 * W)

    itemsize = jnp.dtype(x.dtype).itemsize
    block_rows = _choose_block_rows(M, W, Wo, itemsize, vmem_block_budget_bytes)
    grid = (pl.cdiv(M, block_rows),)   # ragged tail is safe: rows are independent

    out2d = pl.pallas_call(
        _maxpool2x2_kernel,
        out_shape=jax.ShapeDtypeStruct((M, Wo), x.dtype),
        grid_spec=pltpu.PrefetchScalarGridSpec(
            num_scalar_prefetch=0,
            grid=grid,
            in_specs=[pl.BlockSpec((block_rows, 2 * W), lambda i: (i, 0))],
            out_specs=pl.BlockSpec((block_rows, Wo), lambda i: (i, 0)),
        ),
        compiler_params=pltpu.CompilerParams(
            dimension_semantics=("parallel",),
            # Above the 16/32 MiB scoped defaults (v5e / v6e, v7x) so the large
            # blocks actually fit, but below v7x's 64 MiB physical VMEM; the
            # block-row budget above keeps live buffers around ~20 MiB.
            vmem_limit_bytes=48 * 1024 * 1024,
        ),
    )(x2)

    return out2d.reshape(N, C, Ho, Wo)


class MaxPooling:
    """Mirror of the PyTorch wrapper module (no learnable parameters)."""

    def __init__(self, in_channels=None, out_channels=None, kernel_size=2,
                 stride=2, padding=0):
        del in_channels, out_channels, padding  # unused, exactly like the torch module
        assert kernel_size == 2 and stride == 2, \
            "only the module's default 2x2 / stride-2 configuration is implemented"
        # TODO(synk): general kernel_size/stride would need a different in-kernel tap pattern.

    def __call__(self, x):
        return max_pool_2x2(x)


if __name__ == "__main__":
    key = jax.random.PRNGKey(0)

    # Shape implied by the module's usage (NCHW activations).
    N, C, H, W = 2, 4, 16, 16
    x = jax.random.normal(key, (N, C, H, W), dtype=jnp.float32)

    pool = MaxPooling(in_channels=C, out_channels=C)
    y = jax.block_until_ready(pool(x))
    assert y.shape == (N, C, H // 2, W // 2), y.shape

    ref = lax.reduce_window(x, -jnp.inf, lax.max,
                            (1, 1, 2, 2), (1, 1, 2, 2), "VALID")
    assert jnp.allclose(y, ref), "f32 max-pool mismatch vs reference"

    # bf16 end-to-end (memory-bound kernel: half the bytes).
    xb = x.astype(jnp.bfloat16)
    yb = jax.block_until_ready(max_pool_2x2(xb))
    refb = lax.reduce_window(xb.astype(jnp.float32), -jnp.inf, lax.max,
                             (1, 1, 2, 2), (1, 1, 2, 2), "VALID")
    assert jnp.allclose(yb.astype(jnp.float32), refb), "bf16 max-pool mismatch"

    # Odd spatial extents: PyTorch floor-drops the trailing row/column.
    x_odd = jax.random.normal(jax.random.PRNGKey(1), (2, 3, 9, 15), jnp.float32)
    y_odd = jax.block_until_ready(max_pool_2x2(x_odd))
    ref_odd = lax.reduce_window(x_odd, -jnp.inf, lax.max,
                                (1, 1, 2, 2), (1, 1, 2, 2), "VALID")
    assert y_odd.shape == (2, 3, 4, 7) and jnp.allclose(y_odd, ref_odd)

    print("KERNEL_OK")
</pallas_src>

<mosaic_0001>
module attributes {stable_mosaic.version = 11 : i64} {
  func.func @_maxpool2x2_kernel(%arg0: i32, %arg1: memref<64x32xf32, #tpu.memory_space<vmem>>, %arg2: memref<64x8xf32, #tpu.memory_space<vmem>>) attributes {dimension_semantics = [#tpu.dimension_semantics<parallel>], iteration_bounds = array<i64: 1>, scalar_prefetch = 0 : i64, scratch_operands = 0 : i64, tpu.core_type = #tpu.core_type<tc>, window_params = [{transform_indices = @transform_0, window_bounds = array<i64: 64, 32>}, {transform_indices = @transform_1, window_bounds = array<i64: 64, 8>}]} {
    %c0 = arith.constant 0 : index
    %c0_0 = arith.constant 0 : index
    %0 = vector.load %arg1[%c0, %c0_0] : memref<64x32xf32, #tpu.memory_space<vmem>>, vector<64x32xf32>
    %1 = vector.extract_strided_slice %0 {offsets = [0, 0], sizes = [64, 16], strides = [1, 1]} : vector<64x32xf32> to vector<64x16xf32>
    %2 = vector.extract_strided_slice %0 {offsets = [0, 16], sizes = [64, 16], strides = [1, 1]} : vector<64x32xf32> to vector<64x16xf32>
    %3 = arith.maximumf %1, %2 : vector<64x16xf32>
    %4 = vector.extract_strided_slice %3 {offsets = [0, 0], sizes = [64, 15], strides = [1, 1]} : vector<64x16xf32> to vector<64x15xf32>
    %5 = vector.extract_strided_slice %3 {offsets = [0, 1], sizes = [64, 15], strides = [1, 1]} : vector<64x16xf32> to vector<64x15xf32>
    %6 = arith.maximumf %4, %5 : vector<64x15xf32>
    %7 = tpu.iota {dimensions = array<i32: 1>} : vector<64x15xi32>
    %c1_i32 = arith.constant 1 : i32
    %8 = vector.broadcast %c1_i32 : i32 to vector<64x15xi32>
    %9 = arith.andi %7, %8 : vector<64x15xi32>
    %c0_i32 = arith.constant 0 : i32
    %10 = vector.broadcast %c0_i32 : i32 to vector<64x15xi32>
    %11 = arith.cmpi eq, %9, %10 : vector<64x15xi32>
    %c0_i32_1 = arith.constant 0 : i32
    %12 = arith.sitofp %c0_i32_1 : i32 to f32
    %13 = vector.broadcast %12 : f32 to vector<64x15xf32>
    %14 = arith.select %11, %6, %13 : vector<64x15xi1>, vector<64x15xf32>
    %15 = tpu.iota {dimensions = array<i32: 0>} : vector<15x8xi32>
    %16 = tpu.iota {dimensions = array<i32: 1>} : vector<15x8xi32>
    %c2_i32 = arith.constant 2 : i32
    %17 = vector.broadcast %c2_i32 : i32 to vector<15x8xi32>
    %18 = arith.muli %17, %16 : vector<15x8xi32>
    %19 = arith.cmpi eq, %15, %18 : vector<15x8xi32>
    %20 = arith.extui %19 : vector<15x8xi1> to vector<15x8xi32>
    %21 = arith.sitofp %20 : vector<15x8xi32> to vector<15x8xf32>
    %22 = arith.truncf %14 : vector<64x15xf32> to vector<64x15xbf16>
    %23 = arith.extf %22 : vector<64x15xbf16> to vector<64x15xf32>
    %24 = tpu.weird %23 : vector<64x15xf32> -> vector<64x15xi1>
    %cst = arith.constant dense<true> : vector<64x15xi1>
    %25 = arith.xori %24, %cst : vector<64x15xi1>
    %26 = arith.subf %14, %23 : vector<64x15xf32>
    %cst_2 = arith.constant 0.000000e+00 : f32
    %27 = vector.broadcast %cst_2 : f32 to vector<64x15xf32>
    %28 = arith.select %25, %26, %27 : vector<64x15xi1>, vector<64x15xf32>
    %29 = arith.truncf %28 : vector<64x15xf32> to vector<64x15xbf16>
    %30 = arith.extf %29 : vector<64x15xbf16> to vector<64x15xf32>
    %31 = arith.subf %28, %30 : vector<64x15xf32>
    %cst_3 = arith.constant dense<0.000000e+00> : vector<64x8xf32>
    %32 = tpu.matmul %23, %21, %cst_3 {dimension_numbers = #tpu.dot_dimension_numbers<[1], [0], [0], [1], [0, 0, 1, 1], [], []>} : vector<64x15xf32>, vector<15x8xf32>, vector<64x8xf32> -> vector<64x8xf32>
    %cst_4 = arith.constant dense<0.000000e+00> : vector<64x8xf32>
    %33 = tpu.matmul %30, %21, %cst_4 {dimension_numbers = #tpu.dot_dimension_numbers<[1], [0], [0], [1], [0, 0, 1, 1], [], []>} : vector<64x15xf32>, vector<15x8xf32>, vector<64x8xf32> -> vector<64x8xf32>
    %34 = arith.addf %32, %33 : vector<64x8xf32>
    %cst_5 = arith.constant dense<0.000000e+00> : vector<64x8xf32>
    %35 = tpu.matmul %31, %21, %cst_5 {dimension_numbers = #tpu.dot_dimension_numbers<[1], [0], [0], [1], [0, 0, 1, 1], [], []>} : vector<64x15xf32>, vector<15x8xf32>, vector<64x8xf32> -> vector<64x8xf32>
    %36 = arith.addf %34, %35 : vector<64x8xf32>
    %c0_6 = arith.constant 0 : index
    %c0_7 = arith.constant 0 : index
    %37 = vector.load %arg2[%c0_6, %c0_7] : memref<64x8xf32, #tpu.memory_space<vmem>>, vector<64x8xf32>
    tpu.vector_store %arg2[%c0_6, %c0_7], %36 {strides = array<i32>} : memref<64x8xf32, #tpu.memory_space<vmem>>, vector<64x8xf32>,
    return
  }
  func.func @transform_0(%arg0: i32) -> (i32, i32) {
    %c0_i32 = arith.constant 0 : i32
    %c0_i32_0 = arith.constant 0 : i32
    return %arg0, %c0_i32 : i32, i32
  }
  func.func @transform_1(%arg0: i32) -> (i32, i32) {
    %c0_i32 = arith.constant 0 : i32
    %c0_i32_0 = arith.constant 0 : i32
    return %arg0, %c0_i32 : i32, i32
  }
}

</mosaic_0001>

<bundles_post_ra>
// kernel: tpu_custom_call.1
= control target key start
LH: loop header
LB: loop body
LE: loop exit
PB: predicated region body
PF: predicated region fallthrough
CT: control target
= control target key end

     0   :  { %s714_s10 = smov 112   ;;  %v96_v8 = vlaneseq  ;;  %s715_s23 = smov 127   ;;  %v716_v20 = vmov 0.0   ;;  %vm207_vm1 = vcmask 1046528   ;;  %v717_v27 = vmov 1.0   ;;  %s937_s0 = inlined_call_operand.vmem [shape: f32[64,32], index: 0, kind: input, shape index: {}]   ;;  %s938_s1 = inlined_call_operand.vmem [shape: f32[64,8], index: 1, kind: output, shape index: {}]  }
   0x1   :  { %v12_v0 = vld [vmem:[%s937_s0 + $0x20] sm:$0xff]  ;;  %v13_v2 = vld [vmem:[%s937_s0 + $0x28] sm:$0xff]  ;;  %v14_v4 = vld [vmem:[%s937_s0 + $0x30] sm:$0xff]  ;;  %vm718_vm6 = vmmov 1   ;;  %vm182_vm10 = vcmask 121856  }
   0x2   :  { %v8_v1 = vld [vmem:[%s937_s0] sm:$0xff]  ;;  %32 = vrot.lane.b32.xlu0 %v12_v0, %s714_s10  ;;  %v9_v3 = vld [vmem:[%s937_s0 + $0x8] sm:$0xff]  ;;  %v15_v5 = vld [vmem:[%s937_s0 + $0x38] sm:$0xff]  ;;  %v97_v11 = vand.u32 127, %v96_v8  ;;  %v109_v12 = vshrl.u32 %v96_v8, 7 }
   0x3   :  { %24 = vrot.lane.b32.xlu1 %v8_v1, %s714_s10  ;;  %v10_v6 = vld [vmem:[%s937_s0 + $0x10] sm:$0xff]  ;;  %v11_v7 = vld [vmem:[%s937_s0 + $0x18] sm:$0xff] }
   0x4   :  { %v110_v14 = vadd.s32 8, %v109_v12  ;;  %v111_v15 = vmul.u32 2, %v97_v11  ;;  %v98_v33 = vand.u32 1, %v97_v11 }
   0x6   :  { %34 = vrot.lane.b32.xlu0 %v13_v2, %s714_s10  ;;  %vm113_vm0 = vcmp.eq.s32.totalorder %v110_v14, %v111_v15  ;;  %vm764_vm2 = vcmp.eq.s32.totalorder %v109_v12, %v111_v15  ;;  %vm791_vm3 = vcmp.eq.s32.totalorder %v98_v33, 0 }
   0x7   :  { %26 = vrot.lane.b32.xlu1 %v9_v3, %s714_s10  ;;  %v754_v21 = vsel %vm113_vm0, 1.0, %v716_v20 }
   0x8   :  { %705 = vmatprep.subr.msk.mxu1 %vm207_vm1, %v754_v21  ;;  %657 = vmatprep.subr.msk.mxu0 %vm207_vm1, %v754_v21 }
   0x9   :  { %707 = vmatpush3.msk.msra.mxu1 %vm207_vm1, %v754_v21  ;;  %658 = vmatpush3.msk.msra.mxu0 %vm207_vm1, %v754_v21 }
   0xa   :  { %36 = vrot.lane.b32.xlu0 %v14_v4, %s714_s10  ;;  %706 = vmatprep.subr.msk.mxu1 %vm764_vm2, %v717_v27 }
   0xb   :  { %38 = vrot.lane.b32.xlu1 %v15_v5, %s714_s10  ;;  %659 = vmatprep.subr.msk.mxu0 %vm764_vm2, %v717_v27 }
   0xc   :  { %708 = vmatpush3.msk.msra.mxu1 %vm764_vm2, %v717_v27  ;;  %660 = vmatpush3.msk.msra.mxu0 %vm764_vm2, %v717_v27 }
   0xd   :  { %673 = vmatprep.subr.msk.mxu1 %vm207_vm1, %v754_v21  ;;  %689 = vmatprep.subr.msk.mxu0 %vm207_vm1, %v754_v21 }
   0xe   :  { %28 = vrot.lane.b32.xlu0 %v10_v6, %s714_s10 }
   0xf   :  { %30 = vrot.lane.b32.xlu1 %v11_v7, %s714_s10 }
  0x74   :  { %v33_v9 = vpop.permute.xlu0 %32 }
  0x75   :  { %v25_v10 = vpop.permute.xlu1 %24  ;;  %v52_v13 = vmax.f32 %v12_v0, %v33_v9 }
  0x76   :  { %v48_v16 = vmax.f32 %v8_v1, %v25_v10 }
  0x77   :  { %72 = vrot.lane.b32.xlu0 %v52_v13, %s715_s23 }
  0x78   :  { %v35_v17 = vpop.permute.xlu0 %34 }
  0x79   :  { %v27_v18 = vpop.permute.xlu1 %26  ;;  %v53_v19 = vmax.f32 %v13_v2, %v35_v17 }
  0x7a   :  { %v49_v22 = vmax.f32 %v9_v3, %v27_v18 }
  0x7b   :  { %74 = vrot.lane.b32.xlu1 %v53_v19, %s715_s23  ;;  %64 = vrot.lane.b32.xlu0 %v48_v16, %s715_s23 }
  0x7c   :  { %v37_v23 = vpop.permute.xlu0 %36 }
  0x7d   :  { %v39_v24 = vpop.permute.xlu1 %38  ;;  %v54_v26 = vmax.f32 %v14_v4, %v37_v23 }
  0x7e   :  { %v55_v28 = vmax.f32 %v15_v5, %v39_v24 }
  0x7f   :  { %76 = vrot.lane.b32.xlu0 %v54_v26, %s715_s23  ;;  %66 = vrot.lane.b32.xlu1 %v49_v22, %s715_s23 }
  0x80   :  { %v29_v29 = vpop.permute.xlu0 %28 }
  0x81   :  { %v31_v30 = vpop.permute.xlu1 %30  ;;  %v50_v31 = vmax.f32 %v10_v6, %v29_v29 }
  0x82   :  { %v51_v32 = vmax.f32 %v11_v7, %v31_v30 }
  0x83   :  { %68 = vrot.lane.b32.xlu0 %v50_v31, %s715_s23  ;;  %78 = vrot.lane.b32.xlu1 %v55_v28, %s715_s23 }
  0x87   :  { %70 = vrot.lane.b32.xlu1 %v51_v32, %s715_s23 }
  0xe9   :  { %v73_v34 = vpop.permute.xlu0 %72 }
  0xea   :  { %v92_v35 = vmax.f32 %v52_v13, %v73_v34 }
  0xec   :  { %v104_v40 = vsel %vm791_vm3, %v92_v35, 0.0 }
  0xed   :  { %v65_v37 = vpop.permute.xlu0 %64  ;;  %v75_v38 = vpop.permute.xlu1 %74 }
  0xee   :  { %v93_v39 = vmax.f32 %v53_v19, %v75_v38  ;;  %v88_v41 = vmax.f32 %v48_v16, %v65_v37 }
  0xf0   :  { %v105_v42 = vsel %vm791_vm3, %v93_v39, 0.0  ;;  %v100_v50 = vsel %vm791_vm3, %v88_v41, 0.0 }
  0xf1   :  { %v120_v43 = vpack.c.bf16 %v105_v42, %v104_v40  ;;  %v77_v44 = vpop.permute.xlu0 %76  ;;  %v67_v45 = vpop.permute.xlu1 %66 }
  0xf2   :  { %v89_v46 = vmax.f32 %v49_v22, %v67_v45  ;;  %v94_v49 = vmax.f32 %v54_v26, %v77_v44 }
  0xf3   :  { %v799_v47 = vunpack.c.l.bf16 %v120_v43  ;;  %v801_v48 = vunpack.c.h.bf16 %v120_v43 }
  0xf4   :  { %v101_v51 = vsel %vm791_vm3, %v89_v46, 0.0  ;;  %v106_v58 = vsel %vm791_vm3, %v94_v49, 0.0 }
  0xf5   :  { %v151_v52 = vsub.f32 %v105_v42, %v801_v48  ;;  %v118_v53 = vpack.c.bf16 %v101_v51, %v100_v50  ;;  %v69_v54 = vpop.permute.xlu0 %68  ;;  %v79_v55 = vpop.permute.xlu1 %78  ;;  %vm134_vm4 = vweird.f32 %v799_v47  ;;  %vm135_vm5 = vweird.f32 %v801_v48 }
  0xf6   :  { %v95_v56 = vmax.f32 %v55_v28, %v79_v55  ;;  %vm142_vm7 = vmxor %vm134_vm4, %vm718_vm6  ;;  %v150_v57 = vsub.f32 %v104_v40, %v799_v47  ;;  %v90_v61 = vmax.f32 %v50_v31, %v69_v54 }
  0xf7   :  { %v814_v59 = vunpack.c.l.bf16 %v118_v53  ;;  %v816_v60 = vunpack.c.h.bf16 %v118_v53  ;;  %vm143_vm8 = vmxor %vm135_vm5, %vm718_vm6 }
  0xf8   :  { %v107_v62 = vsel %vm791_vm3, %v95_v56, 0.0  ;;  %v821_v63 = vsel %vm142_vm7, %v150_v57, 0.0  ;;  %v823_v0 = vsel %vm143_vm8, %v151_v52, 0.0  ;;  %v102_v11 = vsel %vm791_vm3, %v90_v61, 0.0 }
  0xf9   :  { %v147_v1 = vsub.f32 %v101_v51, %v816_v60  ;;  %v121_v2 = vpack.c.bf16 %v107_v62, %v106_v58  ;;  %v71_v3 = vpop.permute.xlu1 %70  ;;  %v828_v4 = vpack.c.bf16 %v823_v0, %v821_v63  ;;  %vm130_vm9 = vweird.f32 %v814_v59 }
  0xfa   :  { %v91_v5 = vmax.f32 %v51_v32, %v71_v3  ;;  %vm131_vm11 = vweird.f32 %v816_v60  ;;  %vm138_vm12 = vmxor %vm130_vm9, %vm718_vm6  ;;  %v146_v6 = vsub.f32 %v100_v50, %v814_v59 }
  0xfb   :  { %v834_v7 = vunpack.c.l.bf16 %v121_v2  ;;  %v836_v8 = vunpack.c.h.bf16 %v121_v2  ;;  %v170_v9 = vunpack.c.l.bf16 %v828_v4  ;;  %v171_v10 = vunpack.c.h.bf16 %v828_v4  ;;  %vm139_vm13 = vmxor %vm131_vm11, %vm718_vm6 }
  0xfc   :  { %v103_v12 = vsel %vm791_vm3, %v91_v5, 0.0  ;;  %v154_v13 = vsel %vm138_vm12, %v146_v6, 0.0  ;;  %v155_v14 = vsel %vm139_vm13, %v147_v1, 0.0 }
  0xfd   :  { %vm136_vm14 = vweird.f32 %v834_v7  ;;  %vm137_vm15 = vweird.f32 %v836_v8  ;;  %v152_v15 = vsub.f32 %v106_v58, %v834_v7  ;;  %v153_v16 = vsub.f32 %v107_v62, %v836_v8  ;;  %667 = vmatprep.mubr.msk.f32.mxu1 %vm182_vm10, %v170_v9 }
  0xfe   :  { %vm144_vm0 = vmxor %vm136_vm14, %vm718_vm6  ;;  %v119_v17 = vpack.c.bf16 %v103_v12, %v102_v11  ;;  %668 = vmatmul.mubr.msk.f32.vlgmr.msra.gmra.mxu1 %vm182_vm10, %v171_v10  ;;  %v162_v18 = vpack.c.bf16 %v155_v14, %v154_v13  ;;  %v178_v39 = vsub.f32 %v821_v63, %v170_v9  ;;  %v179_v40 = vsub.f32 %v823_v0, %v171_v10 }
  0xff   :  { %vm145_vm3 = vmxor %vm137_vm15, %vm718_vm6  ;;  %v160_v19 = vsel %vm144_vm0, %v152_v15, 0.0  ;;  %674 = vmatpush3.msk.msra.mxu1 %vm207_vm1, %v754_v21 }
 0x100   :  { %v161_v20 = vsel %vm145_vm3, %v153_v16, 0.0  ;;  %v124_v22 = vunpack.c.l.bf16 %v119_v17  ;;  %v125_v23 = vunpack.c.h.bf16 %v119_v17  ;;  %v166_v24 = vunpack.c.l.bf16 %v162_v18  ;;  %675 = vmatprep.subr.msk.mxu1 %vm764_vm2, %v717_v27 }
 0x101   :  { %v165_v26 = vpack.c.bf16 %v161_v20, %v160_v19  ;;  %v167_v28 = vunpack.c.h.bf16 %v162_v18  ;;  %676 = vmatpush3.msk.msra.mxu1 %vm764_vm2, %v717_v27 }
 0x102   :  { %vm132_vm4 = vweird.f32 %v124_v22  ;;  %vm133_vm5 = vweird.f32 %v125_v23  ;;  %v148_v29 = vsub.f32 %v102_v11, %v124_v22  ;;  %v149_v30 = vsub.f32 %v103_v12, %v125_v23  ;;  %661 = vmatprep.mubr.msk.f32.mxu0 %vm182_vm10, %v166_v24 }
 0x103   :  { %v173_v31 = vunpack.c.h.bf16 %v165_v26  ;;  %vm140_vm7 = vmxor %vm132_vm4, %vm718_vm6  ;;  %662 = vmatmul.mubr.msk.f32.vlgmr.msra.gmra.mxu0 %vm182_vm10, %v167_v28  ;;  %v172_v32 = vunpack.c.l.bf16 %v165_v26  ;;  %v175_v38 = vsub.f32 %v155_v14, %v167_v28 }
 0x104   :  { %vm141_vm8 = vmxor %vm133_vm5, %vm718_vm6  ;;  %v156_v33 = vsel %vm140_vm7, %v148_v29, 0.0  ;;  %690 = vmatpush3.msk.msra.mxu0 %vm207_vm1, %v754_v21  ;;  %v174_v21 = vsub.f32 %v154_v13, %v166_v24  ;;  %vm582_vm1 = vcmask 64512  }
 0x105   :  { %v157_v34 = vsel %vm141_vm8, %v149_v30, 0.0  ;;  %670 = vmatprep.mubr.msk.f32.mxu1 %vm182_vm10, %v172_v32  ;;  %691 = vmatprep.subr.msk.mxu0 %vm764_vm2, %v717_v27  ;;  %v180_v41 = vsub.f32 %v160_v19, %v172_v32  ;;  %v181_v42 = vsub.f32 %v161_v20, %v173_v31 }
 0x106   :  { %v163_v35 = vpack.c.bf16 %v157_v34, %v156_v33  ;;  %671 = vmatmul.mubr.msk.f32.gmra.mxu1 %vm182_vm10, %v173_v31  ;;  %692 = vmatpush3.msk.msra.mxu0 %vm764_vm2, %v717_v27 }
 0x107   :  { %677 = vmatprep.mubr.msk.f32.mxu1 %vm182_vm10, %v814_v59 }
 0x108   :  { %v169_v36 = vunpack.c.h.bf16 %v163_v35  ;;  %v168_v37 = vunpack.c.l.bf16 %v163_v35 }
 0x10a   :  { %664 = vmatprep.mubr.msk.f32.mxu0 %vm182_vm10, %v168_v37  ;;  %678 = vmatmul.mubr.msk.f32.vlgmr.msra.gmra.mxu1 %vm182_vm10, %v816_v60  ;;  %v176_v25 = vsub.f32 %v156_v33, %v168_v37  ;;  %v177_v27 = vsub.f32 %v157_v34, %v169_v36 }
 0x10b   :  { %665 = vmatmul.mubr.msk.f32.gmra.mxu0 %vm182_vm10, %v169_v36  ;;  %680 = vmatprep.mubr.msk.f32.mxu1 %vm182_vm10, %v124_v22 }
 0x10c   :  { %693 = vmatprep.mubr.msk.f32.mxu0 %vm182_vm10, %v174_v21 }
 0x10e   :  { %681 = vmatmul.mubr.msk.f32.gmra.mxu1 %vm182_vm10, %v125_v23 }
 0x10f   :  { %694 = vmatmul.mubr.msk.f32.vlgmr.msra.gmra.mxu0 %vm182_vm10, %v175_v38  ;;  %683 = vmatprep.mubr.msk.f32.mxu1 %vm182_vm10, %v799_v47 }
 0x110   :  { %696 = vmatprep.mubr.msk.f32.mxu0 %vm182_vm10, %v176_v25 }
 0x112   :  { %684 = vmatmul.mubr.msk.f32.gmra.mxu1 %vm182_vm10, %v801_v48 }
 0x113   :  { %697 = vmatmul.mubr.msk.f32.gmra.mxu0 %vm182_vm10, %v177_v27  ;;  %686 = vmatprep.mubr.msk.f32.mxu1 %vm182_vm10, %v834_v7 }
 0x114   :  { %699 = vmatprep.mubr.msk.f32.mxu0 %vm182_vm10, %v178_v39 }
 0x116   :  { %687 = vmatmul.mubr.msk.f32.gmra.mxu1 %vm182_vm10, %v836_v8 }
 0x117   :  { %700 = vmatmul.mubr.msk.f32.gmra.mxu0 %vm182_vm10, %v179_v40 }
 0x118   :  { %702 = vmatprep.mubr.msk.f32.mxu0 %vm182_vm10, %v180_v41 }
 0x11b   :  { %703 = vmatmul.mubr.msk.f32.gmra.mxu0 %vm182_vm10, %v181_v42 }
 0x1be   :  { %v669_v43 = vpop.f32.mrf.mxu1 }
 0x1c0   :  { %v297_v44 = vpop.f32.mrf.mxu1 }
 0x1c3   :  { %v663_v45 = vpop.f32.mrf.mxu0 }
 0x1c5   :  { %v277_v48 = vpop.f32.mrf.mxu0 }
 0x1c6   :  { %v672_v46 = vpop.f32.mrf.mxu1 }
 0x1c8   :  { %v307_v47 = vpop.f32.mrf.mxu1 }
 0x1ca   :  { %v679_v49 = vpop.f32.mrf.mxu1 }
 0x1cb   :  { %v666_v50 = vpop.f32.mrf.mxu0  ;;  %v412_v53 = vadd.f32 %v679_v49, %v663_v45 }
 0x1cc   :  { %v406_v51 = vpop.f32.mrf.mxu1 }
 0x1cd   :  { %v287_v52 = vpop.f32.mrf.mxu0  ;;  %v407_v56 = vadd.f32 %v406_v51, %v277_v48 }
 0x1ce   :  { %v682_v54 = vpop.f32.mrf.mxu1 }
 0x1cf   :  { %v695_v55 = vpop.f32.mrf.mxu0  ;;  %v422_v60 = vadd.f32 %v682_v54, %v666_v50 }
 0x1d0   :  { %v575_v57 = vadd.f32 %v695_v55, %v412_v53  ;;  %v416_v58 = vpop.f32.mrf.mxu1 }
 0x1d1   :  { %v535_v59 = vpop.f32.mrf.mxu0  ;;  %v417_v0 = vadd.f32 %v416_v58, %v287_v52 }
 0x1d2   :  { %584 = vst.msk [vmem:[%s938_s1 + $0x8] sm:$0xff] %vm582_vm1, %v575_v57  ;;  %v574_v61 = vadd.f32 %v535_v59, %v407_v56  ;;  %v685_v62 = vpop.f32.mrf.mxu1 }
 0x1d3   :  { %v698_v63 = vpop.f32.mrf.mxu0  ;;  %v432_v4 = vadd.f32 %v685_v62, %v669_v43 }
 0x1d4   :  { %583 = vst.msk [vmem:[%s938_s1] sm:$0xff] %vm582_vm1, %v574_v61  ;;  %v577_v1 = vadd.f32 %v698_v63, %v422_v60  ;;  %v426_v2 = vpop.f32.mrf.mxu1 }
 0x1d5   :  { %v545_v3 = vpop.f32.mrf.mxu0  ;;  %v427_v8 = vadd.f32 %v426_v2, %v297_v44 }
 0x1d6   :  { %586 = vst.msk [vmem:[%s938_s1 + $0x18] sm:$0xff] %vm582_vm1, %v577_v1  ;;  %v576_v5 = vadd.f32 %v545_v3, %v417_v0  ;;  %v688_v6 = vpop.f32.mrf.mxu1 }
 0x1d7   :  { %v701_v7 = vpop.f32.mrf.mxu0  ;;  %v442_v12 = vadd.f32 %v688_v6, %v672_v46 }
 0x1d8   :  { %585 = vst.msk [vmem:[%s938_s1 + $0x10] sm:$0xff] %vm582_vm1, %v576_v5  ;;  %v579_v9 = vadd.f32 %v701_v7, %v432_v4  ;;  %v436_v10 = vpop.f32.mrf.mxu1 }
 0x1d9   :  { %v555_v11 = vpop.f32.mrf.mxu0  ;;  %v437_v15 = vadd.f32 %v436_v10, %v307_v47 }
 0x1da   :  { %588 = vst.msk [vmem:[%s938_s1 + $0x28] sm:$0xff] %vm582_vm1, %v579_v9  ;;  %v578_v13 = vadd.f32 %v555_v11, %v427_v8 }
 0x1db   :  { %v704_v14 = vpop.f32.mrf.mxu0 }
 0x1dc   :  { %587 = vst.msk [vmem:[%s938_s1 + $0x20] sm:$0xff] %vm582_vm1, %v578_v13  ;;  %v581_v16 = vadd.f32 %v704_v14, %v442_v12 }
 0x1dd   :  { %v565_v17 = vpop.f32.mrf.mxu0 }
 0x1de   :  { %590 = vst.msk [vmem:[%s938_s1 + $0x38] sm:$0xff] %vm582_vm1, %v581_v16  ;;  %v580_v18 = vadd.f32 %v565_v17, %v437_v15 }
 0x1e0   :  { %589 = vst.msk [vmem:[%s938_s1 + $0x30] sm:$0xff] %vm582_vm1, %v580_v18 }

</bundles_post_ra>
